<compile_context>
chip_gen: v5e
topology: v5e:2x2
jax: 0.10.0
libtpu: 0.0.40
codegen_flags: <defaults>
</compile_context>

<pallas_src>
import math
from functools import partial

import jax
import jax.numpy as jnp
from jax.experimental import pallas as pl
from jax.experimental.pallas import tpu as pltpu


# ---------------------------------------------------------------------------
# hardware-aware budgets & tiling helpers
# ---------------------------------------------------------------------------
def _round_up(a, m):
    return ((a + m - 1) // m) * m


def _vmem_budget_bytes():
    """Scoped-VMEM budget we are willing to request, leaving headroom for the
    compiler's own scratch.  v5e/v6e (128 MiB physical) -> ~96 MiB;
    v7x (64 MiB physical per TensorCore) -> ~40 MiB."""
    cap = 128 * 1024 * 1024
    try:
        info = pltpu.get_tpu_info()
        cap = int(getattr(info, "vmem_capacity_bytes", cap))
    except Exception:
        pass
    return max(cap * 5 // 8, cap - 32 * 1024 * 1024, 16 * 1024 * 1024)


def _choose_group(hw, c):
    """Smallest g with (g*c) % 128 == 0 and hw % g == 0, else 1 (masked but
    correct partial-lane stores)."""
    if c % 128 == 0:
        return 1
    g = 128 // math.gcd(c, 128)
    if hw % g == 0:
        return g
    return 1


_TILE_CANDIDATES = (4096, 2048, 1024, 512, 256, 128, 64, 32, 16, 8)


def _choose_tile_rows(r, cp, itemsize, requested, tile_budget):
    """Pick the HW tile (rows) for the two-pass path.

    Returns (TR, R_pad).  Prefers exact divisors of r (no padding copy);
    otherwise the largest multiple-of-8 tile within budget, with r padded up
    to a multiple of it (padding rows are zero and do not affect sum(x^2))."""
    if requested is not None:
        tr = int(requested)
        if tr >= r:
            tr = _round_up(r, 8)
            return tr, tr
        if tr % 8 != 0:
            tr = max(8, (tr // 8) * 8)
        return tr, _round_up(r, tr)
    for tr in _TILE_CANDIDATES:
        if tr <= r and r % tr == 0 and tr * cp * itemsize <= tile_budget:
            return tr, r
    for tr in _TILE_CANDIDATES:
        if tr * cp * itemsize <= tile_budget:
            tr = min(tr, _round_up(r, 8))
            return tr, _round_up(r, tr)
    return 8, _round_up(r, 8)


def _choose_chunk_rows(r, cp):
    """Rows per inner chunk of the fused kernel (bounds live f32 temporaries
    to ~0.5 MiB per slice).  Returns None if no useful chunking exists (block
    is small or has no multiple-of-8 divisor)."""
    budget = 512 * 1024  # f32 bytes per chunk slice
    for cr in (1024, 512, 256, 128, 64, 32, 16, 8):
        if cr < r and r % cr == 0 and cr * cp * 4 <= budget:
            return cr
    return None


# ---------------------------------------------------------------------------
# shared in-kernel helper
# ---------------------------------------------------------------------------
def _coef_from_sumsq(sumsq_p, gamma_p_f32, g):
    """Per-packed-channel coefficient coef = gamma * Nx + 1, all f32.

    sumsq_p:     (1, CP) f32, sum of squares per packed column (CP = g*C).
    gamma_p_f32: (1, CP) f32, gamma tiled g times.
    """
    cp = sumsq_p.shape[-1]
    c = cp // g
    total = sumsq_p
    if g > 1:
        # log2 doubling tree of cyclic rolls (g = 128 // gcd(C,128) is always
        # a power of two); after log2(g) XLU rotations every packed column
        # holds its channel's total over all g group offsets.
        shift = c
        for _ in range(int(round(math.log2(g)))):
            total = total + pltpu.roll(total, shift=shift, axis=1)
            shift *= 2
    gx = jnp.sqrt(total)                                   # per-channel L2 norm, repeated g times
    # Each channel appears exactly g times, so the mean over CP equals the
    # mean over the C true channels (no dilution).
    mean_gx = jnp.mean(gx, axis=-1, keepdims=True)         # (1, 1)
    nx = gx * pl.reciprocal(mean_gx + 1e-6, approx=False)  # (1, CP)
    return gamma_p_f32 * nx + 1.0                          # (1, CP) f32


# ---------------------------------------------------------------------------
# kernels
# ---------------------------------------------------------------------------
def _grn_fused_kernel(x_ref, gamma_ref, beta_ref, o_ref, acc_ref, *, g, chunk):
    """Single pass: whole (R, CP) image block resident in VMEM, x read from
    HBM exactly once.  sum(x^2) and the apply are done chunk-by-chunk so only
    ~chunk rows of f32 temporaries are live at any time."""
    r = x_ref.shape[0]
    gamma32 = gamma_ref[...]                               # (1, CP) f32
    beta32 = beta_ref[...]                                 # (1, CP) f32

    if chunk is None or chunk >= r:
        # Small block: single shot.
        x32 = x_ref[...].astype(jnp.float32)
        sumsq = jnp.sum(x32 * x32, axis=0, keepdims=True)
        coef = _coef_from_sumsq(sumsq, gamma32, g)
        o_ref[...] = (x32 * coef + beta32).astype(o_ref.dtype)
        return

    n_chunks = r // chunk
    acc_ref[...] = jnp.zeros_like(acc_ref)

    @pl.loop(0, n_chunks)
    def _reduce(i):
        start = pl.multiple_of(i * chunk, chunk)
        xs = x_ref[pl.ds(start, chunk), :].astype(jnp.float32)
        acc_ref[...] += jnp.sum(xs * xs, axis=0, keepdims=True)

    coef = _coef_from_sumsq(acc_ref[...], gamma32, g)      # (1, CP) f32

    @pl.loop(0, n_chunks)
    def _apply(i):
        start = pl.multiple_of(i * chunk, chunk)
        xs = x_ref[pl.ds(start, chunk), :].astype(jnp.float32)
        o_ref[pl.ds(start, chunk), :] = (xs * coef + beta32).astype(o_ref.dtype)


def _grn_reduce_kernel(x_ref, sumsq_ref):
    """Pass 1 of the tiled path: accumulate per-packed-column sum(x^2) over HW
    tiles into a resident (1, CP) f32 block (one per (image, core-split))."""
    @pl.when(pl.program_id(2) == 0)
    def _init():
        sumsq_ref[...] = jnp.zeros_like(sumsq_ref)

    x32 = x_ref[...].astype(jnp.float32)                   # (TR, CP)
    sumsq_ref[...] += jnp.sum(x32 * x32, axis=0, keepdims=True)


def _grn_apply_kernel(x_ref, coef_ref, beta_ref, o_ref):
    """Pass 2 of the tiled path: out = x * coef + beta, FMA done in f32."""
    x32 = x_ref[...].astype(jnp.float32)                   # (TR, CP)
    o_ref[...] = (x32 * coef_ref[...] + beta_ref[...]).astype(o_ref.dtype)


# ---------------------------------------------------------------------------
# wrapper
# ---------------------------------------------------------------------------
def grn_pallas(x_nhwc, gamma, beta, *, two_pass=None, tile_rows=None,
               vmem_limit_bytes=None):
    """GRN forward.  x_nhwc: (N, H, W, C);  gamma, beta: (1, 1, 1, C)."""
    N, H, W, C = x_nhwc.shape
    HW = H * W
    g = _choose_group(HW, C)
    CP = g * C
    R = HW // g
    itemsize = jnp.dtype(x_nhwc.dtype).itemsize

    x_p = x_nhwc.reshape(N, R, CP)                          # lane-dense packing
    gamma32 = gamma.reshape(1, C).astype(jnp.float32)
    beta32 = beta.reshape(1, C).astype(jnp.float32)
    gamma_p = jnp.tile(gamma32, (1, g))                     # (1, CP) f32
    beta_p = jnp.tile(beta32, (1, g))                       # (1, CP) f32

    budget = _vmem_budget_bytes()
    block_bytes = R * CP * itemsize
    chunk = _choose_chunk_rows(R, CP)
    if chunk is not None:
        fused_need = 4 * block_bytes + 3 * chunk * CP * 4 + (2 << 20)
    else:
        fused_need = 4 * block_bytes + 2 * R * CP * 4 + (2 << 20)

    if two_pass is None:
        # Single pass moves ~2x the tensor bytes over HBM, two-pass ~3x:
        # prefer single pass whenever its double-buffered in+out blocks
        # (plus chunked f32 temporaries) fit the generation-aware budget.
        # TODO(synk): on v7x at batch 1 the two-pass path can still win by
        # feeding both TensorCores; force two_pass=True there if needed.
        two_pass = fused_need > budget

    # ---------------- single pass: full image block per grid step -----------
    if not two_pass:
        vlim = int(vmem_limit_bytes or min(budget, fused_need + (4 << 20)))
        out_p = pl.pallas_call(
            partial(_grn_fused_kernel, g=g, chunk=chunk),
            out_shape=jax.ShapeDtypeStruct((N, R, CP), x_nhwc.dtype),
            grid_spec=pltpu.PrefetchScalarGridSpec(
                num_scalar_prefetch=0,
                grid=(N,),
                in_specs=[
                    pl.BlockSpec((pl.Squeezed(), R, CP), lambda n: (n, 0, 0)),
                    pl.BlockSpec((1, CP), lambda n: (0, 0)),
                    pl.BlockSpec((1, CP), lambda n: (0, 0)),
                ],
                out_specs=pl.BlockSpec((pl.Squeezed(), R, CP),
                                       lambda n: (n, 0, 0)),
                scratch_shapes=[pltpu.VMEM((1, CP), jnp.float32)],
            ),
            compiler_params=pltpu.CompilerParams(
                dimension_semantics=("parallel",),
                vmem_limit_bytes=vlim,
            ),
        )(x_p, gamma_p, beta_p)
        return out_p.reshape(N, H, W, C)

    # ---------------- two pass: reduce -> (tiny JAX finalize) -> apply ------
    tile_budget = 4 * 1024 * 1024                           # per-x-block bytes
    TR, R_pad = _choose_tile_rows(R, CP, itemsize, tile_rows, tile_budget)
    if R_pad != R:
        # Zero rows contribute nothing to sum(x^2); output is sliced back.
        x_p = jnp.pad(x_p, ((0, 0), (0, R_pad - R), (0, 0)))
    n_r = R_pad // TR

    # At batch 1, split the HW reduction into two resident partial-sum blocks
    # so both v7x TensorCores pull from HBM (harmless on 1-TC chips).
    split = 2 if (N == 1 and n_r >= 2 and n_r % 2 == 0) else 1
    rs = n_r // split

    tile_bytes = TR * CP * itemsize
    vlim_reduce = int(vmem_limit_bytes or
                      min(budget, 2 * tile_bytes + 2 * TR * CP * 4 + (4 << 20)))
    vlim_apply = int(vmem_limit_bytes or
                     min(budget, 4 * tile_bytes + 2 * TR * CP * 4 + (4 << 20)))

    # ---- pass 1: per-(image, split) sum of squares -------------------------
    sumsq = pl.pallas_call(
        _grn_reduce_kernel,
        out_shape=jax.ShapeDtypeStruct((N, split, CP), jnp.float32),
        grid_spec=pltpu.PrefetchScalarGridSpec(
            num_scalar_prefetch=0,
            grid=(N, split, rs),
            in_specs=[
                pl.BlockSpec((pl.Squeezed(), TR, CP),
                             lambda n, s, r: (n, s * rs + r, 0)),
            ],
            out_specs=pl.BlockSpec((pl.Squeezed(), 1, CP),
                                   lambda n, s, r: (n, s, 0)),
        ),
        compiler_params=pltpu.CompilerParams(
            dimension_semantics=("parallel", "parallel", "arbitrary"),
            vmem_limit_bytes=vlim_reduce,
        ),
    )(x_p)

    # Tiny per-image finalize (N x C floats) done in plain JAX.
    sumsq_c = sumsq.reshape(N, split * g, C).sum(axis=1)     # (N, C) f32
    gx = jnp.sqrt(sumsq_c)
    nx = gx / (jnp.mean(gx, axis=-1, keepdims=True) + 1e-6)
    coef = gamma32 * nx + 1.0                                # (N, C) f32
    coef_p = jnp.tile(coef, (1, g)).reshape(N, 1, CP)        # (N, 1, CP) f32

    # ---- pass 2: out = x * coef + beta (fully parallel streaming) ----------
    out_p = pl.pallas_call(
        _grn_apply_kernel,
        out_shape=jax.ShapeDtypeStruct((N, R_pad, CP), x_nhwc.dtype),
        grid_spec=pltpu.PrefetchScalarGridSpec(
            num_scalar_prefetch=0,
            grid=(N, n_r),
            in_specs=[
                pl.BlockSpec((pl.Squeezed(), TR, CP), lambda n, r: (n, r, 0)),
                pl.BlockSpec((pl.Squeezed(), 1, CP), lambda n, r: (n, 0, 0)),
                pl.BlockSpec((1, CP), lambda n, r: (0, 0)),
            ],
            out_specs=pl.BlockSpec((pl.Squeezed(), TR, CP),
                                   lambda n, r: (n, r, 0)),
        ),
        compiler_params=pltpu.CompilerParams(
            dimension_semantics=("parallel", "parallel"),
            vmem_limit_bytes=vlim_apply,
        ),
    )(x_p, coef_p, beta_p)

    if R_pad != R:
        out_p = out_p[:, :R, :]
    return out_p.reshape(N, H, W, C)


def grn_reference(x, gamma, beta):
    """Pure-JAX reference matching the PyTorch forward exactly."""
    gx = jnp.sqrt(jnp.sum(jnp.square(x), axis=(1, 2), keepdims=True))
    nx = gx / (jnp.mean(gx, axis=-1, keepdims=True) + 1e-6)
    return gamma * (x * nx) + beta + x


if __name__ == "__main__":
    key = jax.random.PRNGKey(0)
    kx, kg, kb = jax.random.split(key, 3)

    def make_case(shape, k0, k1, k2):
        n, h, w, c = shape
        x = jax.random.normal(k0, (n, h, w, c), dtype=jnp.float32)
        # Module __init__ uses zeros(1,1,1,dim); init non-zero so the
        # normalization path is actually exercised (synthetic params).
        gm = 0.1 * jax.random.normal(k1, (1, 1, 1, c), dtype=jnp.float32)
        bt = 0.1 * jax.random.normal(k2, (1, 1, 1, c), dtype=jnp.float32)
        return x, gm, bt

    def check(out, ref):
        assert out.shape == ref.shape and out.dtype == ref.dtype
        err = float(jnp.max(jnp.abs(out - ref)))
        assert err < 1e-4, err

    # Case 1: default routing -> single-pass fused kernel (chunked reduction).
    x, gamma, beta = make_case((2, 16, 16, 32), kx, kg, kb)
    ref = grn_reference(x, gamma, beta)
    check(jax.block_until_ready(grn_pallas(x, gamma, beta)), ref)

    # Case 2: forced two-pass tiled path (reduce -> JAX finalize -> apply).
    check(jax.block_until_ready(
        grn_pallas(x, gamma, beta, two_pass=True, tile_rows=16)), ref)

    # Case 3: batch-1 two-pass with the reduce split across two partial-sum
    # blocks (feeds both TensorCores on v7x).
    x1, gamma1, beta1 = make_case((1, 16, 16, 32), kg, kb, kx)
    ref1 = grn_reference(x1, gamma1, beta1)
    check(jax.block_until_ready(
        grn_pallas(x1, gamma1, beta1, two_pass=True, tile_rows=8)), ref1)

    # Case 4: non-divisible spatial size (14x14) -> padded two-pass tiles.
    x2, gamma2, beta2 = make_case((1, 14, 14, 48), kb, kx, kg)
    ref2 = grn_reference(x2, gamma2, beta2)
    check(jax.block_until_ready(grn_pallas(x2, gamma2, beta2, two_pass=True)),
          ref2)

    print("KERNEL_OK")
</pallas_src>

<mosaic_0001>
module attributes {stable_mosaic.version = 11 : i64} {
  func.func @_grn_fused_kernel(%arg0: i32, %arg1: memref<1x64x128xf32, #tpu.memory_space<vmem>>, %arg2: memref<1x128xf32, #tpu.memory_space<vmem>>, %arg3: memref<1x128xf32, #tpu.memory_space<vmem>>, %arg4: memref<1x64x128xf32, #tpu.memory_space<vmem>>, %arg5: memref<1x128xf32, #tpu.memory_space<vmem>>) attributes {dimension_semantics = [#tpu.dimension_semantics<parallel>], iteration_bounds = array<i64: 2>, scalar_prefetch = 0 : i64, scratch_operands = 1 : i64, tpu.core_type = #tpu.core_type<tc>, window_params = [{transform_indices = @transform_0, window_bounds = array<i64: 1, 64, 128>}, {pipeline_mode = #tpu.pipeline_mode<synchronous>, transform_indices = @transform_1, window_bounds = array<i64: 1, 128>}, {pipeline_mode = #tpu.pipeline_mode<synchronous>, transform_indices = @transform_2, window_bounds = array<i64: 1, 128>}, {transform_indices = @transform_3, window_bounds = array<i64: 1, 64, 128>}]} {
    %c0 = arith.constant 0 : index
    %c0_0 = arith.constant 0 : index
    %0 = vector.load %arg2[%c0, %c0_0] : memref<1x128xf32, #tpu.memory_space<vmem>>, vector<1x128xf32>
    %c0_1 = arith.constant 0 : index
    %c0_2 = arith.constant 0 : index
    %1 = vector.load %arg3[%c0_1, %c0_2] : memref<1x128xf32, #tpu.memory_space<vmem>>, vector<1x128xf32>
    %cst = arith.constant 0.000000e+00 : f32
    %2 = vector.broadcast %cst : f32 to vector<1x128xf32>
    %c0_3 = arith.constant 0 : index
    %c0_4 = arith.constant 0 : index
    %3 = vector.load %arg5[%c0_3, %c0_4] : memref<1x128xf32, #tpu.memory_space<vmem>>, vector<1x128xf32>
    tpu.vector_store %arg5[%c0_3, %c0_4], %2 {strides = array<i32>} : memref<1x128xf32, #tpu.memory_space<vmem>>, vector<1x128xf32>,
    %c0_i32 = arith.constant 0 : i32
    %c2_i32 = arith.constant 2 : i32
    %4 = arith.addi %c0_i32, %c2_i32 : i32
    %c1_i32 = arith.constant 1 : i32
    scf.for %arg6 = %c0_i32 to %4 step %c1_i32  : i32 {
      %c1_i32_16 = arith.constant 1 : i32
      %24 = arith.muli %arg6, %c1_i32_16 : i32
      %c0_i32_17 = arith.constant 0 : i32
      %25 = arith.addi %c0_i32_17, %24 : i32
      %c32_i32_18 = arith.constant 32 : i32
      %26 = arith.muli %25, %c32_i32_18 : i32
      %27 = tpu.assume_multiple %26, 32 : i32
      %c0_19 = arith.constant 0 : index
      %28 = arith.index_cast %27 : i32 to index
      %c0_20 = arith.constant 0 : index
      %29 = vector.load %arg1[%c0_19, %28, %c0_20] : memref<1x64x128xf32, #tpu.memory_space<vmem>>, vector<1x32x128xf32>
      %30 = vector.shape_cast %29 : vector<1x32x128xf32> to vector<32x128xf32>
      %c0_21 = arith.constant 0 : index
      %c0_22 = arith.constant 0 : index
      %31 = vector.load %arg5[%c0_21, %c0_22] : memref<1x128xf32, #tpu.memory_space<vmem>>, vector<1x128xf32>
      %32 = arith.mulf %30, %30 : vector<32x128xf32>
      %cst_23 = arith.constant dense<0.000000e+00> : vector<128xf32>
      %33 = vector.multi_reduction <add>, %32, %cst_23 [0] : vector<32x128xf32> to vector<128xf32>
      %34 = vector.shape_cast %33 : vector<128xf32> to vector<1x128xf32>
      %35 = arith.addf %31, %34 : vector<1x128xf32>
      %c0_24 = arith.constant 0 : index
      %c0_25 = arith.constant 0 : index
      %36 = vector.load %arg5[%c0_24, %c0_25] : memref<1x128xf32, #tpu.memory_space<vmem>>, vector<1x128xf32>
      tpu.vector_store %arg5[%c0_24, %c0_25], %35 {strides = array<i32>} : memref<1x128xf32, #tpu.memory_space<vmem>>, vector<1x128xf32>,
    }
    %c2_i32_5 = arith.constant 2 : i32
    %c0_6 = arith.constant 0 : index
    %c0_7 = arith.constant 0 : index
    %5 = vector.load %arg5[%c0_6, %c0_7] : memref<1x128xf32, #tpu.memory_space<vmem>>, vector<1x128xf32>
    %c32_i32 = arith.constant 32 : i32
    %6 = tpu.dynamic_rotate %5 by %c32_i32 dim 1 : vector<1x128xf32>, i32 -> vector<1x128xf32>
    %7 = arith.addf %5, %6 : vector<1x128xf32>
    %c64_i32 = arith.constant 64 : i32
    %8 = tpu.dynamic_rotate %7 by %c64_i32 dim 1 : vector<1x128xf32>, i32 -> vector<1x128xf32>
    %9 = arith.addf %7, %8 : vector<1x128xf32>
    %10 = math.sqrt %9 : vector<1x128xf32>
    %cst_8 = arith.constant dense<0.000000e+00> : vector<1xf32>
    %11 = vector.multi_reduction <add>, %10, %cst_8 [1] : vector<1x128xf32> to vector<1xf32>
    %12 = vector.shape_cast %11 : vector<1xf32> to vector<1x1xf32>
    %cst_9 = arith.constant 1.280000e+02 : f32
    %13 = vector.broadcast %cst_9 : f32 to vector<1x1xf32>
    %14 = arith.divf %12, %13 : vector<1x1xf32>
    %cst_10 = arith.constant 9.99999997E-7 : f32
    %15 = vector.broadcast %cst_10 : f32 to vector<1x1xf32>
    %16 = arith.addf %14, %15 : vector<1x1xf32>
    %17 = tpu.reciprocal %16 : vector<1x1xf32> -> vector<1x1xf32>
    %18 = vector.broadcast %17 : vector<1x1xf32> to vector<1x128xf32>
    %19 = arith.mulf %10, %18 : vector<1x128xf32>
    %20 = arith.mulf %0, %19 : vector<1x128xf32>
    %cst_11 = arith.constant 1.000000e+00 : f32
    %21 = vector.broadcast %cst_11 : f32 to vector<1x128xf32>
    %22 = arith.addf %20, %21 : vector<1x128xf32>
    %c0_i32_12 = arith.constant 0 : i32
    %c2_i32_13 = arith.constant 2 : i32
    %23 = arith.addi %c0_i32_12, %c2_i32_13 : i32
    %c1_i32_14 = arith.constant 1 : i32
    scf.for %arg6 = %c0_i32_12 to %23 step %c1_i32_14  : i32 {
      %c1_i32_16 = arith.constant 1 : i32
      %24 = arith.muli %arg6, %c1_i32_16 : i32
      %c0_i32_17 = arith.constant 0 : i32
      %25 = arith.addi %c0_i32_17, %24 : i32
      %c32_i32_18 = arith.constant 32 : i32
      %26 = arith.muli %25, %c32_i32_18 : i32
      %27 = tpu.assume_multiple %26, 32 : i32
      %c0_19 = arith.constant 0 : index
      %28 = arith.index_cast %27 : i32 to index
      %c0_20 = arith.constant 0 : index
      %29 = vector.load %arg1[%c0_19, %28, %c0_20] : memref<1x64x128xf32, #tpu.memory_space<vmem>>, vector<1x32x128xf32>
      %30 = vector.shape_cast %29 : vector<1x32x128xf32> to vector<32x128xf32>
      %31 = vector.broadcast %22 : vector<1x128xf32> to vector<32x128xf32>
      %32 = arith.mulf %30, %31 : vector<32x128xf32>
      %33 = vector.broadcast %1 : vector<1x128xf32> to vector<32x128xf32>
      %34 = arith.addf %32, %33 : vector<32x128xf32>
      %c0_21 = arith.constant 0 : index
      %35 = arith.index_cast %27 : i32 to index
      %c0_22 = arith.constant 0 : index
      %36 = vector.load %arg4[%c0_21, %35, %c0_22] : memref<1x64x128xf32, #tpu.memory_space<vmem>>, vector<1x32x128xf32>
      %37 = vector.shape_cast %36 : vector<1x32x128xf32> to vector<32x128xf32>
      %38 = vector.shape_cast %34 : vector<32x128xf32> to vector<1x32x128xf32>
      tpu.vector_store %arg4[%c0_21, %35, %c0_22], %38 {strides = array<i32>} : memref<1x64x128xf32, #tpu.memory_space<vmem>>, vector<1x32x128xf32>,
    }
    %c2_i32_15 = arith.constant 2 : i32
    return
  }
  func.func @transform_0(%arg0: i32) -> (i32, i32, i32) {
    %c0_i32 = arith.constant 0 : i32
    %c0_i32_0 = arith.constant 0 : i32
    %c0_i32_1 = arith.constant 0 : i32
    return %arg0, %c0_i32, %c0_i32_0 : i32, i32, i32
  }
  func.func @transform_1(%arg0: i32) -> (i32, i32) {
    %c0_i32 = arith.constant 0 : i32
    %c0_i32_0 = arith.constant 0 : i32
    %c0_i32_1 = arith.constant 0 : i32
    return %c0_i32, %c0_i32_0 : i32, i32
  }
  func.func @transform_2(%arg0: i32) -> (i32, i32) {
    %c0_i32 = arith.constant 0 : i32
    %c0_i32_0 = arith.constant 0 : i32
    %c0_i32_1 = arith.constant 0 : i32
    return %c0_i32, %c0_i32_0 : i32, i32
  }
  func.func @transform_3(%arg0: i32) -> (i32, i32, i32) {
    %c0_i32 = arith.constant 0 : i32
    %c0_i32_0 = arith.constant 0 : i32
    %c0_i32_1 = arith.constant 0 : i32
    return %arg0, %c0_i32, %c0_i32_0 : i32, i32, i32
  }
}

</mosaic_0001>

<bundles_post_ra>
// kernel: tpu_custom_call.1
= control target key start
LH: loop header
LB: loop body
LE: loop exit
PB: predicated region body
PF: predicated region fallthrough
CT: control target
= control target key end

     0   :  { %8 = vsyncpa [#allocation4], 0  ;;  %s880_s0 = inlined_call_operand.hbm [shape: f32[2,64,128], index: 0, kind: input, shape index: {}]   ;;  %s881_s1 = inlined_call_operand.hbm [shape: f32[1,128], index: 1, kind: input, shape index: {}]   ;;  %s882_s2 = inlined_call_operand.vmem [shape: f32[1,128], index: 2, kind: input, shape index: {}]   ;;  %s883_s3 = inlined_call_operand.hbm [shape: f32[2,64,128], index: 3, kind: output, shape index: {}]  }
   0x1   :  { %10 = vsyncpa [#allocation4 + $0x1], 0 }
   0x2   :  { %11 = vsyncpa [#allocation7], 0 }
   0x3   :  { %12 = vsyncpa [#allocation5], 0 }
   0x4   :  { %14 = vsyncpa [#allocation5 + $0x1], 0  ;;  %s716_s12 = smov 0   ;;  %s718_s13 = smov 0  }
   0x5   :  { %s720_s14 = smov 0   ;;  %s722_s15 = smov 0  }
   0x6 LB: > { %s737_s16 = sadd.s32 4294967295, %s677_s15   ;;  %s432_s17 = sadd.s32 4294967294, %s677_s15   ;;  %s677_s15 = sphi %s722_s15, %s894_s15   ;;  %s673_s14 = sphi %s720_s14, %s893_s14   ;;  %s669_s13 = sphi %s718_s13, %s892_s13   ;;  %s665_s12 = sphi %s716_s12, %s891_s12  }
   0x7   : > { %s741_s18 = sadd.s32 1, %s677_s15   ;;  %s27_s19 = sadd.s32 1, %s673_s14 }
   0x8   : > { %s24_s20 = ssub.s32 %s677_s15, %s741_s18  ;;  %p34_p0 = scmp.ne.s32.totalorder %s673_s14, %s669_s13 }
   0x9   : > { %p25_p1 = scmp.eq.s32.totalorder %s24_s20, 0  ;;  %p35_p2 = scmp.eq.s32.totalorder %s677_s15, 0 }
   0xa   : > { %p40_p3 = scmp.ne.s32.totalorder %s669_s13, %s665_s12  ;;  %p41_p4 = scmp.eq.s32.totalorder %s737_s16, 0 }
   0xb   : > { %s753_s21 = scalar_select %p25_p1, %s673_s14, %s27_s19  }
   0xc   : > { %p755_p5 = por %p35_p2, %p34_p0  ;;  %p761_p6 = por %p41_p4, %p40_p3 }
   0xd   : > { %p106_p7 = scmp.eq.s32.totalorder %s737_s16, 1  ;;  %p112_p8 = scmp.eq.s32.totalorder %s432_s17, 1 }
   0xe   : > { %p433_p9 = scmp.ge.s32.totalorder %s677_s15, 1  ;;  %p119_p10 = scmp.lt.s32.totalorder %s677_s15, 3 }
   0xf   : > { %p768_p11 = por %p106_p7, %p34_p0  ;;  %p772_p12 = por %p112_p8, %p40_p3 }
  0x10   : > { %p776_p13 = pnand %p433_p9, %p119_p10  ;;  %s131_s29 = sshll.u32 %s881_s1, 4  ;;  %s132_s29 = int_to_ptr.hbm [resolvable:$true] %s131_s29 }
  0x11   : > { %s687_s30 = smov [#allocation6]   ;;  %p473_p3 = scmp.lt.s32.totalorder %s677_s15, 2 }
  0x12   : > { %p460_p1 = pneg %p776_p13  ;;  %s133_s4 = sshll.u32 %s687_s30, 4  ;;  %s134_s4 = int_to_ptr.vmem [resolvable:$true] %s133_s4 }
  0x13   : > { %s147_s5 = sand.u32 1, %s673_s14   ;;  %p792_p7 = pnand %p473_p3, %p755_p5 }
  0x14   : > { %p461_p2 = pnand %p460_p1, %p41_p4  ;;  %s436_s7 = sshll.u32 %s147_s5, 6 }
  0x15   : > { %s450_s8 = sshll.u32 %s677_s15, 6  ;;  %s151_s19 = scalar_lea.vmem [#allocation3], %s436_s7 }
  0x16   : > { %463 = dma.hbm_to_vmem [thread:$0]  (!%p461_p2), %s132_s29, 16, %s134_s4, [#allocation7]  }
  0x17   : > { %s156_s11 = scalar_lea.hbm %s880_s0, %s450_s8  ;;  %s159_s20 = sshll.u32 %s151_s19, 4  ;;  %s160_s20 = int_to_ptr.vmem [resolvable:$true] %s159_s20 }
  0x18   : > { %s157_s17 = sshll.u32 %s156_s11, 4  ;;  %s148_s27 = scalar_lea.sflag [#allocation4], %s147_s5  ;;  %s158_s17 = int_to_ptr.hbm [resolvable:$true] %s157_s17 }
  0x19   : > { %s569_s28 = sshra.s32 %s158_s17, 4  ;;  %p573_p8 = pneg %p792_p7  ;;  %s570_s28 = int_to_ptr.hbm [resolvable:$true] %s569_s28 }
  0x1a   : > { %s571_s22 = scalar_lea.hbm %s570_s28, 64  ;;  %s576_s4 = scalar_lea.hbm %s880_s0, 128 }
  0x1b   : > { %p572_p5 = scmp.ne.s32.totalorder %s570_s28, %s571_s22  ;;  %p577_p1 = scmp.lt.s32.totalorder %s570_s28, %s880_s0 }
  0x1c   : > { %p578_p2 = scmp.lt.s32.totalorder %s576_s4, %s571_s22 }
  0x1d   : > { %p574_p9 = pnand %p573_p8, %p572_p5 }
  0x1e   : > { %p579_p3 = por %p578_p2, %p577_p1 }
  0x1f   : > { %p575_p10 = pneg %p574_p9 }
  0x21   : > { %p580_p0 = pnand %p579_p3, %p575_p10 }
  0x23   : > { %583 = shalt.err (!%p580_p0)
}
  0x24   : > { %s688_s5 = smov 128   ;;  %s689_s7 = smov 8  }
  0x25   : > { %467 = dma.hbm_to_vmem [thread:$0]  (!%p792_p7), %s158_s17, 1024, %s160_s20, %s148_s27, %s688_s5, %s688_s5, %s689_s7  }
  0x26   : > { %171 = sbr.rel (%p776_p13) target bundleno = 498 (0x1f2), region = 32  ;;  %s813_s10 = sand.u32 (!%p776_p13), 1, %s669_s13  }
  0x27   : > { %s440_s11 = sshll.u32 (!%p776_p13), %s813_s10, 6  ;;  %s174_s19 = scalar_lea.sflag (!%p776_p13), [#allocation4], %s813_s10 }
  0x28   : > { %s817_s28 = scalar_lea.vmem (!%p776_p13), [#allocation3], %s440_s11 }
  0x2b   : > { %652 = dma.done.wait (%p761_p6), %s174_s19, 1024  }
  0x2c   : > { %654 = vsyncadd (%p761_p6), %s174_s19, 4294966272 }
  0x2d   : > { %656 = dma.done.wait (%p41_p4), [#allocation7], 16  }
  0x2e   : > { %658 = vsyncadd (%p41_p4), [#allocation7], 4294967280  ;;  %v690_v0 = vmov 0.0   ;;  %v827_v1 = vld [vmem:[#allocation6] sm:$0x1]  ;;  %s834_s17 = scalar_lea.vmem [#allocation8], %s440_s11 }
  0x2f   : > { %208 = vst [vmem:[#allocation2] sm:$0x1] %v690_v0  ;;  %v832_v2 = vld [vmem:[%s882_s2] sm:$0x1]  ;;  %s679_s20 = smov 0  }
  0x30 LB: >> { %s443_s23 = sshll.u32 %s681_s20, 5  ;;  %s214_s20 = sadd.s32 1, %s681_s20   ;;  %s681_s20 = sphi %s679_s20, %s214_s20  }
  0x31   : >> { %s216_s27 = scalar_lea.vmem %s817_s28, %s443_s23 [#allocation3]  ;;  %p211_p4 = scmp.ge.s32.totalorder %s214_s20, 2  }
  0x32   : >> { %v217_v3 = vld [vmem:[%s216_s27] sm:$0xff]  ;;  %v218_v4 = vld [vmem:[%s216_s27 + $0x8] sm:$0xff]  ;;  %v219_v5 = vld [vmem:[%s216_s27 + $0x10] sm:$0xff]  ;;  %s691_s22 = smov (%p211_p4), 32   ;;  %s692_s29 = smov (%p211_p4), 64   ;;  %vm256_vm1 = vcmask (%p211_p4), 1040384  }
  0x33   : >> { %v220_v6 = vld [vmem:[%s216_s27 + $0x18] sm:$0xff]  ;;  %v222_v7 = vmul.f32 %v217_v3, %v217_v3  ;;  %v223_v8 = vmul.f32 %v218_v4, %v218_v4  ;;  %v224_v9 = vmul.f32 %v219_v5, %v219_v5  ;;  %v693_v38 = vmov (%p211_p4), 128.0   ;;  %s838_s30 = smov (%p211_p4), 0  }
  0x34   : >> { %v225_v10 = vmul.f32 %v220_v6, %v220_v6 }
  0x35   : >> { %v226_v11 = vadd.f32 %v223_v8, %v222_v7 }
  0x36   : >> { %v221_v19 = vld [vmem:[#allocation2] sm:$0x1] }
  0x37   : >> { %v227_v12 = vadd.f32 %v226_v11, %v224_v9 }
  0x39   : >> { %v228_v13 = vadd.f32 %v227_v12, %v225_v10 }
  0x3b   : >> { %v229_v14 = vrot.slane %v228_v13, 4 }
  0x3d   : >> { %v230_v15 = vadd.f32 %v229_v14, %v228_v13 }
  0x3f   : >> { %v231_v16 = vrot.slane %v230_v15, 2 }
  0x41   : >> { %v232_v17 = vadd.f32 %v231_v16, %v230_v15 }
  0x43   : >> { %v233_v18 = vrot.slane %v232_v17, 1 }
  0x45   : >> { %v234_v20 = vadd.f32 %v233_v18, %v232_v17  ;;  %213 = sbr.rel (!%p211_p4) target bundleno = 48 (0x30), region = 98 }
  0x47   : >> { %v235_v21 = vadd.f32 %v234_v20, %v221_v19 }
  0x49   : >> { %236 = vst [vmem:[#allocation2] sm:$0x1] %v235_v21 }
  0x50   : > { %v237_v22 = vld [vmem:[#allocation2] sm:$0x1] }
  0x51   : > { %238 = vrot.lane.b32.xlu0 %v237_v22, %s691_s22 }
  0xc3   : > { %v239_v23 = vpop.permute.xlu0 %238 }
  0xc4   : > { %v240_v24 = vadd.f32 %v239_v23, %v237_v22 }
  0xc6   : > { %241 = vrot.lane.b32.xlu0 %v240_v24, %s692_s29 }
 0x138   : > { %v242_v25 = vpop.permute.xlu0 %241 }
 0x139   : > { %v243_v26 = vadd.f32 %v242_v25, %v240_v24 }
 0x13b   : > { %533 = vrsqrt.f32 %v243_v26  ;;  %vm251_vm0 = vcmp.eq.f32.partialorder %v243_v26, inf  ;;  %v254_v34 = vand.u32 2147483648, %v243_v26  ;;  %vm253_vm2 = vcmp.eq.f32.partialorder %v243_v26, 0.0 }
 0x13c   : > { %535 = vrcp.f32 %v693_v38 }
 0x141   : > { %v534_v27 = vpop.eup %533 }
 0x142   : > { %v245_v28 = vmul.f32 %v534_v27, %v243_v26  ;;  %v536_v39 = vpop.eup %535 }
 0x143   : > { %v261_v40 = vmul.f32 128.0, %v536_v39  ;;  %vm265_vm3 = vweird.f32 %v536_v39 }
 0x144   : > { %v246_v29 = vmul.f32 %v534_v27, %v245_v28 }
 0x145   : > { %v262_v41 = vsub.f32 1.0, %v261_v40 }
 0x146   : > { %v247_v30 = vmul.f32 0.5, %v246_v29 }
 0x147   : > { %v263_v42 = vmul.f32 %v536_v39, %v262_v41 }
 0x148   : > { %v248_v31 = vsub.f32 1.5, %v247_v30 }
 0x149   : > { %v264_v43 = vadd.f32 %v536_v39, %v263_v42 }
 0x14a   : > { %v249_v32 = vmul.f32 %v534_v27, %v248_v31 }
 0x14b   : > { %v266_v44 = vsel %vm265_vm3, %v536_v39, %v264_v43 }
 0x14c   : > { %v250_v33 = vmul.f32 %v249_v32, %v243_v26 }
 0x14e   : > { %v252_v35 = vsel %vm251_vm0, %v243_v26, %v250_v33 }
 0x14f   : > { %v255_v36 = vsel %vm253_vm2, %v254_v34, %v252_v35 }
 0x150   : > { %v257_v37 = vsel %vm256_vm1, %v255_v36, 0.0 }
 0x151   : > { %258 = vadd.xlane.f32.xlu1 %v257_v37 }
 0x1c4   : > { %v259_v45 = vpop.xlane.xlu1 %258 }
 0x1c5   : > { %v267_v46 = vmul.f32 %v266_v44, %v259_v45 }
 0x1c7   : > { %v268_v47 = vadd.f32 1e-06, %v267_v46 }
 0x1c9   : > { %537 = vrcp.f32 %v268_v47  ;;  %v280_v51 = vand.u32 2147483648, %v268_v47  ;;  %v278_v53 = vand.u32 2147483647, %v268_v47  ;;  %vm274_vm5 = vweird.f32 %v268_v47 }
 0x1cb   : > { %v281_v55 = vor.u32 1.1754944e-38, %v280_v51  ;;  %vm279_vm7 = vcmp.eq.f32.partialorder %v278_v53, 8.507059e+37 }
 0x1cf   : > { %v538_v48 = vpop.eup %537 }
 0x1d0   : > { %v270_v49 = vmul.f32 %v538_v48, %v268_v47  ;;  %vm275_vm4 = vweird.f32 %v538_v48 }
 0x1d1   : > { %vm276_vm6 = vmor %vm274_vm5, %vm275_vm4 }
 0x1d2   : > { %v271_v50 = vsub.f32 1.0, %v270_v49 }
 0x1d4   : > { %v272_v52 = vmul.f32 %v538_v48, %v271_v50 }
 0x1d6   : > { %v273_v54 = vadd.f32 %v538_v48, %v272_v52 }
 0x1d8   : > { %v277_v56 = vsel %vm276_vm6, %v538_v48, %v273_v54 }
 0x1d9   : > { %v282_v57 = vsel %vm279_vm7, %v281_v55, %v277_v56 }
 0x1da   : > { %v283_v58 = vmul.f32 %v282_v57, %v255_v36 }
 0x1dc   : > { %v284_v59 = vmul.f32 %v283_v58, %v827_v1 }
 0x1de   : > { %v285_v60 = vadd.f32 1.0, %v284_v59 }
 0x1df LB: >> { %s444_s4 = sshll.u32 %s685_s30, 5  ;;  %v306_v62 = vperm.slane %v832_v2, 0  ;;  %s291_s30 = sadd.s32 1, %s685_s30   ;;  %s685_s30 = sphi %s838_s30, %s291_s30  }
 0x1e0   : >> { %v299_v61 = vperm.slane %v285_v60, 0  ;;  %s293_s9 = scalar_lea.vmem %s817_s28, %s444_s4 [#allocation3]  ;;  %s312_s8 = scalar_lea.vmem %s834_s17, %s444_s4 [#allocation8] }
 0x1e1   : >> { %v294_v63 = vld [vmem:[%s293_s9] sm:$0xff]  ;;  %v295_v0 = vld [vmem:[%s293_s9 + $0x8] sm:$0xff]  ;;  %v296_v3 = vld [vmem:[%s293_s9 + $0x10] sm:$0xff]  ;;  %p288_p6 = scmp.ge.s32.totalorder %s291_s30, 2  }
 0x1e2   : >> { %v301_v4 = vmul.f32 %v299_v61, %v294_v63  ;;  %v302_v5 = vmul.f32 %v299_v61, %v295_v0  ;;  %v303_v1 = vmul.f32 %v299_v61, %v296_v3  ;;  %v297_v6 = vld [vmem:[%s293_s9 + $0x18] sm:$0xff]  ;;  %s451_s5 = sshll.u32 (%p288_p6), %s737_s16, 6  ;;  %s330_s26 = sshll.u32 (%p288_p6), %s834_s17, 4  ;;  %s331_s26 = int_to_ptr.vmem [resolvable:$true] %s330_s26 }
 0x1e3   : >> { %v304_v7 = vmul.f32 %v299_v61, %v297_v6  ;;  %s329_s19 = scalar_lea.hbm (%p288_p6), %s883_s3, %s451_s5  ;;  %s318_s20 = scalar_lea.sflag (%p288_p6), [#allocation5], %s813_s10 }
 0x1e4   : >> { %v308_v8 = vadd.f32 %v306_v62, %v301_v4  ;;  %v309_v9 = vadd.f32 %v306_v62, %v302_v5  ;;  %v310_v10 = vadd.f32 %v306_v62, %v303_v1  ;;  %s332_s6 = sshll.u32 (%p288_p6), %s329_s19, 4  ;;  %s619_s16 = scalar_lea.hbm (%p288_p6), %s883_s3, 128  ;;  %s333_s6 = int_to_ptr.hbm [resolvable:$true] %s332_s6 }
 0x1e5   : >> { %v311_v11 = vadd.f32 %v306_v62, %v304_v7  ;;  %290 = sbr.rel (!%p288_p6) target bundleno = 479 (0x1df), region = 109  ;;  %s613_s23 = sshra.s32 (%p288_p6), %s333_s6, 4  ;;  %s614_s23 = int_to_ptr.hbm [resolvable:$true] %s613_s23 }
 0x1e6   : >> { %313 = vst [vmem:[%s312_s8] sm:$0xff] %v308_v8  ;;  %s615_s27 = scalar_lea.hbm (%p288_p6), %s614_s23, 64  ;;  %p620_p5 = scmp.lt.s32.totalorder (%p288_p6), %s614_s23, %s883_s3 }
 0x1e7   : >> { %314 = vst [vmem:[%s312_s8 + $0x8] sm:$0xff] %v309_v9  ;;  %p616_p13 = scmp.ne.s32.totalorder (%p288_p6), %s614_s23, %s615_s27  ;;  %p621_p8 = scmp.lt.s32.totalorder (%p288_p6), %s619_s16, %s615_s27 }
 0x1e8   : >> { %315 = vst [vmem:[%s312_s8 + $0x10] sm:$0xff] %v310_v10 }
 0x1e9   : >> { %316 = vst [vmem:[%s312_s8 + $0x18] sm:$0xff] %v311_v11  ;;  %p617_p0 = pnand (%p288_p6), %p616_p13, %p768_p11  ;;  %p622_p9 = por (%p288_p6), %p621_p8, %p620_p5 }
 0x1eb   : > { %p618_p7 = pneg %p617_p0 }
 0x1ed   : > { %p623_p10 = pnand %p622_p9, %p618_p7 }
 0x1ef   : > { %626 = shalt.err (!%p623_p10)
}
 0x1f0   : > { %s694_s10 = smov 128   ;;  %s695_s17 = smov 8  }
 0x1f1   : > { %458 = dma.vmem_to_hbm [thread:$0]  (%p768_p11), %s331_s26, 1024, %s333_s6, %s318_s20, %s694_s10, %s694_s10, %s695_s17  }
 0x1f2 PF: > { %s347_s4 = sand.u32 1, %s665_s12   ;;  %p890_p1 = scmp.ge.s32.totalorder %s677_s15, 2 }
 0x1f3   : > { %s348_s9 = scalar_lea.sflag [#allocation5], %s347_s4 }
 0x1f4   : > { %p469_p2 = pnand %p890_p1, %p772_p12 }
 0x1f6   : > { %p470_p3 = pneg %p469_p2 }
 0x1f8   : > { %660 = dma.done.wait (%p470_p3), %s348_s9, 1024  }
 0x1f9   : > { %662 = vsyncadd (%p470_p3), %s348_s9, 4294966272  ;;  %p17_p4 = scmp.ge.s32.totalorder %s741_s18, 4   ;;  %s891_s12 = smov %s669_s13 }
 0x1fa   : > { %s892_s13 = smov %s673_s14  ;;  %s893_s14 = smov %s753_s21 }
 0x1fb   : > { %s894_s15 = smov %s741_s18  ;;  %19 = sbr.rel (!%p17_p4) target bundleno = 6 (0x6), region = 120 }
 0x200   :  { %354 = vsyncpa [#allocation4], 1 }
 0x201   :  { %356 = vsyncpa [#allocation4 + $0x1], 1 }
 0x202   :  { %357 = vsyncpa [#allocation7], 1 }
 0x203   :  { %358 = vsyncpa [#allocation5], 1 }
 0x204   :  { %360 = vsyncpa [#allocation5 + $0x1], 1 }

</bundles_post_ra>
